<compile_context>
chip_gen: v7x
topology: tpu7x:2x2x1
jax: 0.10.0
libtpu: 0.0.40
codegen_flags: <defaults>
</compile_context>

<pallas_src>
import jax
import jax.numpy as jnp
import numpy as np
from jax.experimental import pallas as pl
from jax.experimental.pallas import tpu as pltpu


DEC_WIDTH = 128  # lane-dense width of the packed decision output slab


def _round_up(n, m):
    return ((n + m - 1) // m) * m


# ----------------------------------------------------------------------------
# Fused Pallas kernel
# ----------------------------------------------------------------------------

def _make_fused_kernel(k_per_node, n_layers, g_last):
    """Builds the fused kernel body (layers unrolled in Python).

    Input refs (in order):
      x_r      : (k, B, G)        regrouped input, x_r[j, b, g] = x[b, g*k + j]
      dk_r     : (k, 1, G)        regrouped Diagonal kernel
      dec_b    : (n_dec,)         all decision biases                  [SMEM]
      w_last   : (G_last, 1)      last decision weight (bf16)
      aug_l    : (G_in, G_out+1)  per hidden layer: [masked_W_l | w_dec^T] bf16
    Output refs:
      h_out    : (B, G_last_pad)  final activation, lane-dense padded to 128
      dec_out  : (B, DEC_WIDTH)   lane-dense slab; column l holds decision l
    """
    n_in = 4 + n_layers

    def kernel(*refs):
        in_refs = refs[:n_in]
        h_out_ref, dec_out_ref = refs[n_in], refs[n_in + 1]
        x_ref, dk_ref, dec_b_ref, wlast_ref = in_refs[:4]
        aug_refs = in_refs[4:]

        # --- layer1: Diagonal (grouped weighted sum over k features/gene),
        # pure VPU fused multiply-adds on (B, G) tiles.
        acc = x_ref[0] * dk_ref[0]
        for j in range(1, k_per_node):
            acc = acc + x_ref[j] * dk_ref[j]
        h = jnp.tanh(acc)                                     # (B, G0) f32

        # Zero-init both lane-dense output slabs once (unmasked full stores,
        # lane-dense HBM writeback).
        dec_out_ref[...] = jnp.zeros_like(dec_out_ref)
        h_out_ref[...] = jnp.zeros_like(h_out_ref)

        # --- hidden PNetLayers: mask folded into weights, decision head of
        # the *input* activation folded in as one extra MXU output column.
        for l in range(n_layers):
            w_ref = aug_refs[l]                               # (G_in, G_out+1)
            g_out = w_ref.shape[1] - 1
            z = jnp.dot(h.astype(jnp.bfloat16), w_ref[...],
                        preferred_element_type=jnp.float32)   # (B, G_out+1)
            d = jax.nn.sigmoid(z[:, g_out:g_out + 1] + dec_b_ref[l])
            dec_out_ref[:, l:l + 1] = d                       # decision l
            h = jnp.tanh(z[:, :g_out])                        # (B, G_out) f32

        # --- final decision head: trailing (B, G_last) @ (G_last, 1) dot.
        d_last = jax.nn.sigmoid(
            jnp.dot(h.astype(jnp.bfloat16), wlast_ref[...],
                    preferred_element_type=jnp.float32)
            + dec_b_ref[n_layers])
        dec_out_ref[:, n_layers:n_layers + 1] = d_last

        # Final activation into the first g_last lanes of the padded slab.
        h_out_ref[:, :g_last] = h

    return kernel


# ----------------------------------------------------------------------------
# Parameter construction (deterministic, xavier-like) and inference folding
# ----------------------------------------------------------------------------

def _xavier(key, shape):
    fan_out, fan_in = shape[0], shape[1]
    limit = float(np.sqrt(6.0 / (fan_in + fan_out)))
    return jax.random.uniform(key, shape, jnp.float32, -limit, limit)


def make_pnet_params(key, n_features, n_genes, pathway_sizes):
    """Raw PNet parameters (mirrors the PyTorch module's layout)."""
    assert n_features % n_genes == 0
    keys = jax.random.split(key, 4 + 4 * len(pathway_sizes))
    ki = iter(keys)

    # layer1: Diagonal(n_genes, input_shape=(None, n_features), bias=False)
    diag_kernel = _xavier(next(ki), (1, n_features))          # (1, F)

    # decision_layer1: nn.Linear(n_genes, 1) — weight row + (nonzero) bias
    w_dec1 = _xavier(next(ki), (1, n_genes))
    b_lim = 1.0 / float(np.sqrt(n_genes))
    b_dec1 = jax.random.uniform(next(ki), (1,), jnp.float32, -b_lim, b_lim)

    layers = []
    dims = [n_genes] + list(pathway_sizes)
    for g_in, g_out in zip(dims[:-1], dims[1:]):
        kernel = _xavier(next(ki), (g_in, g_out))              # SparseTF kernel
        mapp = jax.random.bernoulli(next(ki), 0.5,
                                    (g_in, g_out)).astype(jnp.float32)
        w_dec = _xavier(next(ki), (1, g_out))                  # Dense(1) weight
        b_dec = jnp.zeros((1,), jnp.float32)                   # Dense bias = 0
        layers.append(dict(kernel=kernel, map=mapp, w_dec=w_dec, b_dec=b_dec))

    return dict(diag_kernel=diag_kernel, w_dec1=w_dec1, b_dec1=b_dec1,
                layers=layers)


def fold_inference_params(params):
    """Inference-time prep:
      * fold the sparsity mask into the hidden weights,
      * append decision weight l as an extra output column of hidden weight
        l+1 (decision fused into the MXU matmul), keep the last decision
        weight as a (G_last, 1) column for a trailing dot,
      * cast all matmul weights to bfloat16 (f32 accumulation in-kernel),
      * regroup the Diagonal kernel, pack decision biases for SMEM.
    """
    F = params["diag_kernel"].shape[1]
    G = params["w_dec1"].shape[1]
    k = F // G
    # dk_r[j, 0, g] = diag_kernel[0, g*k + j]
    dk_r = params["diag_kernel"].reshape(G, k).T.reshape(k, 1, G)

    masked = [lp["kernel"] * lp["map"] for lp in params["layers"]]
    w_decs = [params["w_dec1"]] + [lp["w_dec"] for lp in params["layers"]]
    dec_b = jnp.concatenate([params["b_dec1"]] +
                            [lp["b_dec"] for lp in params["layers"]])
    n_layers = len(masked)

    # aug[l] = [masked_W_{l+1} | w_dec_l^T]  (decision over h_l fused)
    aug = [jnp.concatenate([masked[l], w_decs[l].T], axis=1)
           .astype(jnp.bfloat16) for l in range(n_layers)]
    w_dec_last = w_decs[n_layers].T.astype(jnp.bfloat16)       # (G_last, 1)

    return dict(dk_r=dk_r, aug=aug, w_dec_last=w_dec_last, dec_b=dec_b)


# ----------------------------------------------------------------------------
# Forward pass (single fused pallas_call) and pure-JAX reference
# ----------------------------------------------------------------------------

def pnet_forward(x, prep):
    B, F = x.shape
    k = prep["dk_r"].shape[0]
    G = prep["dk_r"].shape[2]
    n_layers = len(prep["aug"])
    n_dec = n_layers + 1
    assert n_dec <= DEC_WIDTH, "too many decision heads for the packed slab"
    G_last = prep["aug"][-1].shape[1] - 1 if n_layers else G
    G_pad = _round_up(G_last, 128)                 # lane-dense h output

    # Layout plumbing in the wrapper: regroup x so the kernel does a pure
    # VPU grouped reduction (no dense indicator matrix, no in-kernel reshape).
    x_r = jnp.transpose(x.reshape(B, G, k), (2, 0, 1))         # (k, B, G)

    kernel = _make_fused_kernel(k, n_layers, G_last)

    vmem = pl.BlockSpec(memory_space=pltpu.MemorySpace.VMEM)
    smem = pl.BlockSpec(memory_space=pltpu.MemorySpace.SMEM)

    inputs = [x_r, prep["dk_r"], prep["dec_b"], prep["w_dec_last"]]
    in_specs = [vmem, vmem, smem, vmem]
    for l in range(n_layers):
        inputs.append(prep["aug"][l])
        in_specs.append(vmem)

    h_pad, dec_slab = pl.pallas_call(
        kernel,
        in_specs=in_specs,
        out_specs=(vmem, vmem),
        out_shape=(jax.ShapeDtypeStruct((B, G_pad), jnp.float32),
                   jax.ShapeDtypeStruct((B, DEC_WIDTH), jnp.float32)),
        compiler_params=pltpu.CompilerParams(
            # Raise v5e's 16 MiB scoped default; harmless on v6e/v7x.
            # TODO(synk): raise further / tile weights at real PNet scale.
            vmem_limit_bytes=32 * 1024 * 1024),
    )(*inputs)

    h_out = h_pad[:, :G_last]
    decisions = [dec_slab[:, l:l + 1] for l in range(n_dec)]
    return h_out, decisions


def pnet_reference(x, params):
    """Pure-JAX f32 reference mirroring the PyTorch forward exactly."""
    B, F = x.shape
    G = params["w_dec1"].shape[1]
    k = F // G
    mult = x * params["diag_kernel"]
    h = jnp.tanh(mult.reshape(B * G, k).sum(axis=1).reshape(B, G))
    d = jax.nn.sigmoid(
        jnp.sum(h * params["w_dec1"], axis=-1, keepdims=True)
        + params["b_dec1"])
    decisions = [d]
    for lp in params["layers"]:
        h = jnp.tanh(jnp.dot(h, lp["kernel"] * lp["map"],
                             precision=jax.lax.Precision.HIGHEST))
        d = jax.nn.sigmoid(
            jnp.sum(h * lp["w_dec"], axis=-1, keepdims=True) + lp["b_dec"])
        decisions.append(d)
    return h, decisions


# ----------------------------------------------------------------------------

if __name__ == "__main__":
    B = 8               # batch
    N_FEATURES = 64     # len(features)
    N_GENES = 32        # len(genes); n_inputs_per_node = 64 // 32 = 2
    PATHWAYS = [16, 8]  # two hidden PNetLayers

    key = jax.random.PRNGKey(0)
    k_x, k_p = jax.random.split(key)
    x = jax.random.normal(k_x, (B, N_FEATURES), jnp.float32)
    params = make_pnet_params(k_p, N_FEATURES, N_GENES, PATHWAYS)
    prep = fold_inference_params(params)

    fwd = jax.jit(pnet_forward)
    h_out, decisions = fwd(x, prep)
    h_out = jax.block_until_ready(h_out)
    decisions = [jax.block_until_ready(d) for d in decisions]

    # correctness check against pure-JAX f32 reference; tolerance loosened
    # deliberately for the bf16 weight cast (f32 accumulation).
    h_ref, dec_ref = pnet_reference(x, params)
    assert h_out.shape == (B, PATHWAYS[-1])
    assert len(decisions) == 1 + len(PATHWAYS)
    np.testing.assert_allclose(np.asarray(h_out), np.asarray(h_ref),
                               rtol=2e-2, atol=2e-2)
    for d, dr in zip(decisions, dec_ref):
        assert d.shape == (B, 1)
        np.testing.assert_allclose(np.asarray(d), np.asarray(dr),
                                   rtol=2e-2, atol=2e-2)

    print("KERNEL_OK")
</pallas_src>

<mosaic_0001>
module attributes {stable_mosaic.version = 11 : i64} {
  func.func @kernel(%arg0: memref<2x8x32xf32, #tpu.memory_space<vmem>>, %arg1: memref<2x1x32xf32, #tpu.memory_space<vmem>>, %arg2: memref<3xf32, #tpu.memory_space<smem>>, %arg3: memref<8x1xbf16, #tpu.memory_space<vmem>>, %arg4: memref<32x17xbf16, #tpu.memory_space<vmem>>, %arg5: memref<16x9xbf16, #tpu.memory_space<vmem>>, %arg6: memref<8x128xf32, #tpu.memory_space<vmem>>, %arg7: memref<8x128xf32, #tpu.memory_space<vmem>>) attributes {dimension_semantics = [], scalar_prefetch = 0 : i64, scratch_operands = 0 : i64, tpu.core_type = #tpu.core_type<tc>} {
    %c0 = arith.constant 0 : index
    %c0_0 = arith.constant 0 : index
    %c0_1 = arith.constant 0 : index
    %0 = vector.load %arg0[%c0, %c0_0, %c0_1] : memref<2x8x32xf32, #tpu.memory_space<vmem>>, vector<1x8x32xf32>
    %1 = vector.shape_cast %0 : vector<1x8x32xf32> to vector<8x32xf32>
    %c0_2 = arith.constant 0 : index
    %c0_3 = arith.constant 0 : index
    %c0_4 = arith.constant 0 : index
    %2 = vector.load %arg1[%c0_2, %c0_3, %c0_4] : memref<2x1x32xf32, #tpu.memory_space<vmem>>, vector<1x1x32xf32>
    %3 = vector.shape_cast %2 : vector<1x1x32xf32> to vector<1x32xf32>
    %4 = vector.broadcast %3 : vector<1x32xf32> to vector<8x32xf32>
    %5 = arith.mulf %1, %4 : vector<8x32xf32>
    %c1 = arith.constant 1 : index
    %c0_5 = arith.constant 0 : index
    %c0_6 = arith.constant 0 : index
    %6 = vector.load %arg0[%c1, %c0_5, %c0_6] : memref<2x8x32xf32, #tpu.memory_space<vmem>>, vector<1x8x32xf32>
    %7 = vector.shape_cast %6 : vector<1x8x32xf32> to vector<8x32xf32>
    %c1_7 = arith.constant 1 : index
    %c0_8 = arith.constant 0 : index
    %c0_9 = arith.constant 0 : index
    %8 = vector.load %arg1[%c1_7, %c0_8, %c0_9] : memref<2x1x32xf32, #tpu.memory_space<vmem>>, vector<1x1x32xf32>
    %9 = vector.shape_cast %8 : vector<1x1x32xf32> to vector<1x32xf32>
    %10 = vector.broadcast %9 : vector<1x32xf32> to vector<8x32xf32>
    %11 = arith.mulf %7, %10 : vector<8x32xf32>
    %12 = arith.addf %5, %11 : vector<8x32xf32>
    %13 = math.tanh %12 : vector<8x32xf32>
    %cst = arith.constant 0.000000e+00 : f32
    %14 = vector.broadcast %cst : f32 to vector<8x128xf32>
    %c0_10 = arith.constant 0 : index
    %c0_11 = arith.constant 0 : index
    %15 = vector.load %arg7[%c0_10, %c0_11] : memref<8x128xf32, #tpu.memory_space<vmem>>, vector<8x128xf32>
    tpu.vector_store %arg7[%c0_10, %c0_11], %14 {strides = array<i32>} : memref<8x128xf32, #tpu.memory_space<vmem>>, vector<8x128xf32>,
    %cst_12 = arith.constant 0.000000e+00 : f32
    %16 = vector.broadcast %cst_12 : f32 to vector<8x128xf32>
    %c0_13 = arith.constant 0 : index
    %c0_14 = arith.constant 0 : index
    %17 = vector.load %arg6[%c0_13, %c0_14] : memref<8x128xf32, #tpu.memory_space<vmem>>, vector<8x128xf32>
    tpu.vector_store %arg6[%c0_13, %c0_14], %16 {strides = array<i32>} : memref<8x128xf32, #tpu.memory_space<vmem>>, vector<8x128xf32>,
    %18 = arith.truncf %13 : vector<8x32xf32> to vector<8x32xbf16>
    %c0_15 = arith.constant 0 : index
    %c0_16 = arith.constant 0 : index
    %19 = vector.load %arg4[%c0_15, %c0_16] : memref<32x17xbf16, #tpu.memory_space<vmem>>, vector<32x17xbf16>
    %cst_17 = arith.constant dense<0.000000e+00> : vector<8x17xf32>
    %20 = tpu.matmul %18, %19, %cst_17 {dimension_numbers = #tpu.dot_dimension_numbers<[1], [0], [0], [1], [0, 0, 1, 1], [], []>} : vector<8x32xbf16>, vector<32x17xbf16>, vector<8x17xf32> -> vector<8x17xf32>
    %21 = vector.extract_strided_slice %20 {offsets = [0, 16], sizes = [8, 1], strides = [1, 1]} : vector<8x17xf32> to vector<8x1xf32>
    %c0_18 = arith.constant 0 : index
    %22 = memref.load %arg2[%c0_18] : memref<3xf32, #tpu.memory_space<smem>>
    %23 = vector.broadcast %22 : f32 to vector<8x1xf32>
    %24 = arith.addf %21, %23 : vector<8x1xf32>
    %25 = arith.negf %24 : vector<8x1xf32>
    %26 = math.exp %25 : vector<8x1xf32>
    %cst_19 = arith.constant 1.000000e+00 : f32
    %27 = vector.broadcast %cst_19 : f32 to vector<8x1xf32>
    %28 = arith.addf %27, %26 : vector<8x1xf32>
    %29 = arith.divf %27, %28 : vector<8x1xf32>
    %c0_20 = arith.constant 0 : index
    %c0_21 = arith.constant 0 : index
    %30 = vector.load %arg7[%c0_20, %c0_21] : memref<8x128xf32, #tpu.memory_space<vmem>>, vector<8x1xf32>
    tpu.vector_store %arg7[%c0_20, %c0_21], %29 {strides = array<i32>} : memref<8x128xf32, #tpu.memory_space<vmem>>, vector<8x1xf32>,
    %31 = vector.extract_strided_slice %20 {offsets = [0, 0], sizes = [8, 16], strides = [1, 1]} : vector<8x17xf32> to vector<8x16xf32>
    %32 = math.tanh %31 : vector<8x16xf32>
    %33 = arith.truncf %32 : vector<8x16xf32> to vector<8x16xbf16>
    %c0_22 = arith.constant 0 : index
    %c0_23 = arith.constant 0 : index
    %34 = vector.load %arg5[%c0_22, %c0_23] : memref<16x9xbf16, #tpu.memory_space<vmem>>, vector<16x9xbf16>
    %cst_24 = arith.constant dense<0.000000e+00> : vector<8x9xf32>
    %35 = tpu.matmul %33, %34, %cst_24 {dimension_numbers = #tpu.dot_dimension_numbers<[1], [0], [0], [1], [0, 0, 1, 1], [], []>} : vector<8x16xbf16>, vector<16x9xbf16>, vector<8x9xf32> -> vector<8x9xf32>
    %36 = vector.extract_strided_slice %35 {offsets = [0, 8], sizes = [8, 1], strides = [1, 1]} : vector<8x9xf32> to vector<8x1xf32>
    %c1_25 = arith.constant 1 : index
    %37 = memref.load %arg2[%c1_25] : memref<3xf32, #tpu.memory_space<smem>>
    %38 = vector.broadcast %37 : f32 to vector<8x1xf32>
    %39 = arith.addf %36, %38 : vector<8x1xf32>
    %40 = arith.negf %39 : vector<8x1xf32>
    %41 = math.exp %40 : vector<8x1xf32>
    %cst_26 = arith.constant 1.000000e+00 : f32
    %42 = vector.broadcast %cst_26 : f32 to vector<8x1xf32>
    %43 = arith.addf %42, %41 : vector<8x1xf32>
    %44 = arith.divf %42, %43 : vector<8x1xf32>
    %c0_27 = arith.constant 0 : index
    %c1_28 = arith.constant 1 : index
    %45 = vector.load %arg7[%c0_27, %c1_28] : memref<8x128xf32, #tpu.memory_space<vmem>>, vector<8x1xf32>
    tpu.vector_store %arg7[%c0_27, %c1_28], %44 {strides = array<i32>} : memref<8x128xf32, #tpu.memory_space<vmem>>, vector<8x1xf32>,
    %46 = vector.extract_strided_slice %35 {offsets = [0, 0], sizes = [8, 8], strides = [1, 1]} : vector<8x9xf32> to vector<8x8xf32>
    %47 = math.tanh %46 : vector<8x8xf32>
    %48 = arith.truncf %47 : vector<8x8xf32> to vector<8x8xbf16>
    %c0_29 = arith.constant 0 : index
    %c0_30 = arith.constant 0 : index
    %49 = vector.load %arg3[%c0_29, %c0_30] : memref<8x1xbf16, #tpu.memory_space<vmem>>, vector<8x1xbf16>
    %cst_31 = arith.constant dense<0.000000e+00> : vector<8x1xf32>
    %50 = tpu.matmul %48, %49, %cst_31 {dimension_numbers = #tpu.dot_dimension_numbers<[1], [0], [0], [1], [0, 0, 1, 1], [], []>} : vector<8x8xbf16>, vector<8x1xbf16>, vector<8x1xf32> -> vector<8x1xf32>
    %c2 = arith.constant 2 : index
    %51 = memref.load %arg2[%c2] : memref<3xf32, #tpu.memory_space<smem>>
    %52 = vector.broadcast %51 : f32 to vector<8x1xf32>
    %53 = arith.addf %50, %52 : vector<8x1xf32>
    %54 = arith.negf %53 : vector<8x1xf32>
    %55 = math.exp %54 : vector<8x1xf32>
    %cst_32 = arith.constant 1.000000e+00 : f32
    %56 = vector.broadcast %cst_32 : f32 to vector<8x1xf32>
    %57 = arith.addf %56, %55 : vector<8x1xf32>
    %58 = arith.divf %56, %57 : vector<8x1xf32>
    %c0_33 = arith.constant 0 : index
    %c2_34 = arith.constant 2 : index
    %59 = vector.load %arg7[%c0_33, %c2_34] : memref<8x128xf32, #tpu.memory_space<vmem>>, vector<8x1xf32>
    tpu.vector_store %arg7[%c0_33, %c2_34], %58 {strides = array<i32>} : memref<8x128xf32, #tpu.memory_space<vmem>>, vector<8x1xf32>,
    %c0_35 = arith.constant 0 : index
    %c0_36 = arith.constant 0 : index
    %60 = vector.load %arg6[%c0_35, %c0_36] : memref<8x128xf32, #tpu.memory_space<vmem>>, vector<8x8xf32>
    tpu.vector_store %arg6[%c0_35, %c0_36], %47 {strides = array<i32>} : memref<8x128xf32, #tpu.memory_space<vmem>>, vector<8x8xf32>,
    return
  }
}

</mosaic_0001>

<bundles_post_ra>
// kernel: pnet_forward.1
= control target key start
LH: loop header
LB: loop body
LE: loop exit
PB: predicated region body
PF: predicated region fallthrough
CT: control target
= control target key end

     0   :  { %13 = vsyncpa [#allocation4], 0  ;;  %s503_s0 = inlined_call_operand.vmem [shape: f32[2,8,32], index: 0, kind: input, shape index: {}]   ;;  %s504_s1 = inlined_call_operand.vmem [shape: f32[2,1,32], index: 1, kind: input, shape index: {}]   ;;  %s505_s2 = inlined_call_operand.vmem [shape: f32[3], index: 2, kind: input, shape index: {}]   ;;  %s506_s3 = inlined_call_operand.vmem [shape: bf16[8,1], index: 3, kind: input, shape index: {}]   ;;  %s507_s4 = inlined_call_operand.vmem [shape: bf16[32,17], index: 4, kind: input, shape index: {}]   ;;  %s508_s5 = inlined_call_operand.vmem [shape: bf16[16,9], index: 5, kind: input, shape index: {}]   ;;  %s509_s6 = inlined_call_operand.hbm [shape: f32[8,128], index: 6, kind: output, shape index: {0}]   ;;  %s510_s7 = inlined_call_operand.vmem [shape: f32[8,128], index: 7, kind: output, shape index: {1}]  }
   0x1   :  { %14 = vsyncpa [#allocation3], 0  ;;  %s25_s26 = sshll.u32 %s505_s2, 4  ;;  %s26_s26 = int_to_ptr.vmem [resolvable:$true] %s25_s26 }
   0x2   :  { %s364_s27 = scalar_lea.vmem %s26_s26, 16  ;;  %p369_p1 = scmp.lt.s32.totalorder %s26_s26, %s26_s26 }
   0x3   :  { %p365_p0 = scmp.ne.s32.totalorder %s26_s26, %s364_s27  ;;  %p370_p2 = scmp.lt.s32.totalorder %s364_s27, %s364_s27 }
   0x5   :  { %p371_p3 = por %p370_p2, %p369_p1 }
   0x7   :  { %p372_p4 = pnand %p371_p3, %p365_p0 }
   0x9   :  { %375 = shalt.err (!%p372_p4)
}
   0xa   :  { %s402_s28 = smov [#allocation2]  }
   0xb   :  { %28 = dma.vmem_to_smem %s26_s26, 16, %s402_s28, [#allocation4]  }
   0xc   :  { %398 = dma.done.wait [#allocation4], 16  }
   0xd   :  { %399 = vsyncadd [#allocation4], 4294967280 }
   0xe   :  { %38 = sfence }
   0xf   :  { %v343_v0 = vld [vmem:[%s507_s4] sm:$0xff]   ;;  %v403_v1 = vmov 0.0   ;;  %v344_v2 = vld [vmem:[%s507_s4 + $0x8] sm:$0xff]   ;;  %vm404_vm0 = vmmov 0   ;;  %vm81_vm1 = vcmask 261120   ;;  %vm150_vm2 = vcmask 130048  }
  0x10   :  { %316 = vmatprep.subr.bf16.mxu0 %v403_v1  ;;  %62 = vst [vmem:[%s510_s7] sm:$0xff] %v403_v1  ;;  %63 = vst [vmem:[#allocation5] sm:$0xff] %v403_v1  ;;  %324 = vmatprep.subr.bf16.mxu1 %v403_v1  ;;  %v40_v3 = vld [vmem:[%s503_s0] sm:$0xff]  ;;  %v295_v5 = vld [vmem:[%s503_s0 + $0x8] sm:$0xff]  ;;  %s125_s0 = sld [smem:[#allocation2]]  ;;  %vm218_vm3 = vcmask 1043456   ;;  %vm138_vm4 = vcmask 7168  }
  0x11   :  { %317 = vmatpush3.bf16.msra.mxu0 %v343_v0  ;;  %320 = vmatprep.mubr.msk.bf16.mxu0 %vm404_vm0, %v403_v1  ;;  %v294_v4 = vld [vmem:[%s504_s1] ss:$0 sm:$0xff]  ;;  %v297_v7 = vld [vmem:[%s504_s1 + $0x1] ss:$0 sm:$0xff]  ;;  %s405_s1 = smov 112   ;;  %s304_s23 = sld [smem:[#allocation2 + $0x1]] }
  0x12   :  { %318 = vmatprep.subr.bf16.mxu0 %v403_v1  ;;  %v48_v6 = vmul.f32 %v294_v4, %v40_v3  ;;  %326 = vmatprep.mubr.msk.bf16.mxu1 %vm404_vm0, %v403_v1  ;;  %v59_v8 = vmul.f32 %v297_v7, %v295_v5  ;;  %v345_v12 = vld [vmem:[%s508_s5] sm:$0xff]   ;;  %vm214_vm5 = vcmask 64512   ;;  %vm207_vm6 = vcmask 15368   ;;  %s306_s26 = sld [smem:[#allocation2 + $0x2]]  ;;  %s407_s27 = smov [#allocation5]  }
  0x13   :  { %325 = vmatpush3.bf16.msra.mxu1 %v345_v12  ;;  %v211_v25 = vld [vmem:[%s506_s3] sm:$0xf]  ;;  %s406_s3 = smov 121   ;;  %s281_s28 = sshll.u32 %s407_s27, 4  ;;  %s282_s28 = int_to_ptr.vmem [resolvable:$true] %s281_s28 }
  0x14   :  { %v60_v9 = vadd.f32 %v59_v8, %v48_v6  ;;  %330 = vmatprep.subr.bf16.mxu1 %v403_v1  ;;  %v220_v26 = vsel %vm218_vm3, %v211_v25, 0  ;;  %s376_s29 = scalar_lea.vmem %s282_s28, 128  ;;  %p381_p6 = scmp.lt.s32.totalorder %s282_s28, %s282_s28 }
  0x15   :  { %319 = vmatpush3.bf16.msra.mxu0 %v344_v2  ;;  %p377_p5 = scmp.ne.s32.totalorder %s282_s28, %s376_s29  ;;  %p382_p7 = scmp.lt.s32.totalorder %s376_s29, %s376_s29 }
  0x16   :  { %346 = vtanh.f32 %v60_v9  ;;  %v126_v13 = vstv %s125_s0 }
  0x17   :  { %v195_v28 = vstv %s304_s23  ;;  %p383_p8 = por %p382_p7, %p381_p6 }
  0x18   :  { %v213_v41 = vstv %s306_s26 }
  0x19   :  { %p384_p9 = pnand %p383_p8, %p377_p5 }
  0x20   :  { %v347_v10 = vpop.eup %346 }
  0x21   :  { %v64_v11 = vpack.c.bf16 %v347_v10, %v347_v10 }
  0x23   :  { %321 = vmatmul.mubr.msk.bf16.vlgmr.msra.gmra.mrb[0].mxu0 %vm81_vm1, %v64_v11 }
  0xf6   :  { %v119_v14 = vpop.f32.mrb[0].mxu0 }
  0xf7   :  { %v127_v15 = vadd.f32 %v126_v13, %v119_v14  ;;  %348 = vtanh.f32 %v119_v14  ;;  %v322_v16 = vpop.f32.mrb[1].mxu0 }
  0xf8   :  { %v122_v17 = vpop.f32.mrb[2].mxu0 }
  0xf9   :  { %v301_v18 = vmul.f32 -1.442695, %v127_v15  ;;  %v323_v19 = vpop.f32.mrb[3].mxu0 }
  0xfb   :  { %350 = vpow2.f32 %v301_v18 }
 0x101   :  { %v349_v20 = vpop.eup %348 }
 0x102   :  { %v141_v21 = vpack.c.bf16 %v349_v20, %v349_v20 }
 0x104   :  { %327 = vmatmul.mubr.msk.bf16.vlgmr.msra.gmra.mrb[0].mxu1 %vm150_vm2, %v141_v21 }
 0x105   :  { %v351_v22 = vpop.eup %350  ;;  %332 = vmatprep.mubr.msk.bf16.mxu1 %vm404_vm0, %v403_v1  ;;  %331 = vmatpush3.bf16.msra.mxu1 %v220_v26 }
 0x106   :  { %v131_v23 = vadd.f32 1.0, %v351_v22 }
 0x108   :  { %352 = vrcp.f32 %v131_v23 }
 0x112   :  { %v353_v24 = vpop.eup %352 }
 0x113   :  { %135 = vrot.lane.b32.xlu0 %v353_v24, %s405_s1 }
 0x185   :  { %v136_v27 = vpop.permute.xlu0 %135 }
 0x186   :  { %139 = vst.msk [vmem:[%s510_s7] sm:$0xff] %vm138_vm4, %v136_v27 }
 0x1d7   :  { %v188_v29 = vpop.f32.mrb[0].mxu1 }
 0x1d8   :  { %v196_v30 = vadd.f32 %v195_v28, %v188_v29  ;;  %354 = vtanh.f32 %v188_v29  ;;  %v328_v31 = vpop.f32.mrb[1].mxu1 }
 0x1d9   :  { %v191_v32 = vpop.f32.mrb[2].mxu1 }
 0x1da   :  { %v305_v33 = vmul.f32 -1.442695, %v196_v30  ;;  %v329_v34 = vpop.f32.mrb[3].mxu1 }
 0x1dc   :  { %356 = vpow2.f32 %v305_v33 }
 0x1e2   :  { %v355_v35 = vpop.eup %354 }
 0x1e3   :  { %v210_v36 = vpack.c.bf16 %v355_v35, %v355_v35  ;;  %274 = vst.msk [vmem:[#allocation5] sm:$0xff] %vm214_vm5, %v355_v35 }
 0x1e5   :  { %333 = vmatmul.mubr.msk.bf16.vlgmr.msra.gmra.mrb[4].mxu1 %vm214_vm5, %v210_v36 }
 0x1e6   :  { %v357_v37 = vpop.eup %356 }
 0x1e7   :  { %v200_v38 = vadd.f32 1.0, %v357_v37 }
 0x1e9   :  { %358 = vrcp.f32 %v200_v38 }
 0x1f3   :  { %v359_v39 = vpop.eup %358 }
 0x1f4   :  { %204 = vrot.lane.b32.xlu0 %v359_v39, %s406_s3 }
 0x266   :  { %v205_v40 = vpop.permute.xlu0 %204 }
 0x267   :  { %208 = vst.msk [vmem:[%s510_s7] sm:$0xff] %vm207_vm6, %v205_v40 }
 0x2b8   :  { %v256_v42 = vpop.f32.mrb[4].mxu1 }
 0x2b9   :  { %v257_v43 = vadd.f32 %v256_v42, %v213_v41  ;;  %v334_v44 = vpop.f32.mrb[5].mxu1 }
 0x2ba   :  { %v259_v45 = vpop.f32.mrb[6].mxu1 }
 0x2bb   :  { %v308_v46 = vmul.f32 -1.442695, %v257_v43  ;;  %v335_v47 = vpop.f32.mrb[7].mxu1 }
 0x2bd   :  { %360 = vpow2.f32 %v308_v46 }
 0x2c7   :  { %v361_v48 = vpop.eup %360 }
 0x2c8   :  { %v265_v49 = vadd.f32 1.0, %v361_v48 }
 0x2c9   :  { %387 = shalt.err (!%p384_p9)
}
 0x2ca   :  { %s388_s8 = scalar_lea.hbm %s509_s6, 128 }
 0x2cb   :  { %p389_p10 = scmp.ne.s32.totalorder %s509_s6, %s388_s8  ;;  %p392_p11 = scmp.lt.u32.totalorder %s388_s8, %s509_s6 }
 0x2cd   :  { %p394_p12 = pnand %p392_p11, %p389_p10 }
 0x2cf   :  { %397 = shalt.err (!%p394_p12)
}
 0x2d0   :  { %284 = dma.vmem_to_hbm [thread:$0]  %s282_s28, 128, %s509_s6, [#allocation3]   ;;  %362 = vrcp.f32 %v265_v49  ;;  %vm272_vm7 = vcmask 23568  }
 0x2d1   :  { %s408_s15 = smov 2  }
 0x2da   :  { %v363_v50 = vpop.eup %362 }
 0x2db   :  { %269 = vrot.lane.b32.xlu1 %v363_v50, %s408_s15 }
 0x34d   :  { %v270_v51 = vpop.permute.xlu1 %269 }
 0x34e   :  { %273 = vst.msk [vmem:[%s510_s7] sm:$0xff] %vm272_vm7, %v270_v51 }
 0x34f   :  { %400 = dma.done.wait [#allocation3], 128  }
 0x350   :  { %401 = vsyncadd [#allocation3], 4294967168 }
 0x351   :  { %292 = vsyncpa [#allocation3], 1 }
 0x352   :  { %293 = vsyncpa [#allocation4], 1 }

</bundles_post_ra>
